<compile_context>
chip_gen: v7x
topology: tpu7x:2x2x1
jax: 0.10.0
libtpu: 0.0.40
codegen_flags: <defaults>
</compile_context>

<pallas_src>
import jax
import jax.numpy as jnp
from jax.experimental import pallas as pl
from jax.experimental.pallas import tpu as pltpu

# Problem sizes (small, consistent with the module's forward).
B, CIN, H, W = 2, 4, 16, 16
COUT = 32            # backbone model.out_dim
PROJ = 128           # ClassificationWrapper outp_dim (default 128)
KH = KW = 3
PAD = 1
BHW = B * H * W      # 512
KK = KH * KW * CIN   # 36
KKP = 64             # lane-padded patch width: cols 0..35 taps, 36 ones, rest 0
HWIN = H * W         # 256


def _cls_wrapper_kernel(patches_ref, wconv_ref, wcls_ref, out_ref):
    """Single-pass forward; all operands flat in VMEM.

    patches_ref: (BHW, KKP)      bf16 im2col patches; col KK is 1.0 (bias hook)
    wconv_ref  : (KKP, COUT)     bf16 conv weight (dy,dx,cin)xCOUT; row KK = bias
    wcls_ref   : (COUT+1, PROJ)  f32 classifier weight; row COUT = bias
    out_ref    : (B, PROJ)       f32 logits
    """
    # Conv (+ folded bias) as ONE bf16 MXU dot with f32 accumulation, then ReLU.
    acc = jnp.dot(patches_ref[...], wconv_ref[...],
                  preferred_element_type=jnp.float32)           # (512, 32) f32
    acc = jnp.maximum(acc, 0.0)

    # Global average pool: pure sublane relabel (512 -> 2x256) + sublane reduce.
    feat = acc.reshape(B, HWIN, COUT).sum(axis=1) * jnp.float32(1.0 / HWIN)

    # Head: single Linear(COUT, PROJ); f32 dot (default MXU precision already
    # covered by the 2e-2 tolerance), bias is the last row of wcls_ref.
    w = wcls_ref[:COUT, :]                                       # (32, 128)
    b = wcls_ref[COUT:COUT + 1, :]                               # (1, 128)
    logits = jnp.dot(feat, w, preferred_element_type=jnp.float32) + b
    out_ref[...] = logits.astype(out_ref.dtype)                  # (2, 128)


@jax.jit
def classification_wrapper_forward(x_nchw, wconv, bconv, wcls, bcls):
    # im2col preprocessing over ~8 KB of input: NCHW -> NHWC, zero pad, 9 static
    # slices -> (512, 36), then pad to 64 lanes with a ones column at col 36
    # (folds the conv bias into the dot) and cast to bf16.  allow_input_fusion
    # lets XLA fuse this producer chain into the pallas_call.
    x = jnp.transpose(x_nchw, (0, 2, 3, 1))                      # (B, H, W, CIN)
    xp = jnp.pad(x, ((0, 0), (PAD, PAD), (PAD, PAD), (0, 0)))
    patches = jnp.concatenate(
        [xp[:, dy:dy + H, dx:dx + W, :] for dy in range(KH) for dx in range(KW)],
        axis=-1,
    ).reshape(BHW, KK)                                           # (512, 36)
    patches = jnp.concatenate(
        [patches,
         jnp.ones((BHW, 1), jnp.float32),                        # bias hook
         jnp.zeros((BHW, KKP - KK - 1), jnp.float32)], axis=-1,
    ).astype(jnp.bfloat16)                                       # (512, 64) bf16

    wconv_aug = jnp.concatenate(
        [wconv.reshape(KK, COUT),
         bconv.reshape(1, COUT),                                 # bias row at KK
         jnp.zeros((KKP - KK - 1, COUT), jnp.float32)], axis=0,
    ).astype(jnp.bfloat16)                                       # (64, 32) bf16

    wcls_aug = jnp.concatenate([wcls, bcls.reshape(1, PROJ)],
                               axis=0)                           # (33, 128) f32

    flops = 2 * (BHW * KKP * COUT + B * COUT * PROJ) + BHW * COUT
    bytes_accessed = (2 * (BHW * KKP + KKP * COUT)
                      + 4 * ((COUT + 1) * PROJ + B * PROJ))
    return pl.pallas_call(
        _cls_wrapper_kernel,
        out_shape=jax.ShapeDtypeStruct((B, PROJ), jnp.float32),
        in_specs=[pl.BlockSpec(memory_space=pltpu.MemorySpace.VMEM)] * 3,
        out_specs=pl.BlockSpec(memory_space=pltpu.MemorySpace.VMEM),
        compiler_params=pltpu.CompilerParams(
            allow_input_fusion=[True, True, True]),
        cost_estimate=pl.CostEstimate(flops=flops, transcendentals=0,
                                      bytes_accessed=bytes_accessed),
    )(patches, wconv_aug, wcls_aug)


def init_params(key):
    k1, k2, k3, k4 = jax.random.split(key, 4)
    # Deterministic, Kaiming-ish scaled init (synthetic weights, no checkpoint).
    wconv = jax.random.normal(k1, (KH, KW, CIN, COUT), jnp.float32) * (
        2.0 / (KH * KW * CIN)) ** 0.5
    bconv = jax.random.normal(k2, (1, COUT), jnp.float32) * 0.01
    wcls = jax.random.normal(k3, (COUT, PROJ), jnp.float32) * (1.0 / COUT) ** 0.5
    bcls = jax.random.normal(k4, (1, PROJ), jnp.float32) * 0.01
    return wconv, bconv, wcls, bcls


def reference_forward(x_nchw, wconv, bconv, wcls, bcls):
    # Plain-XLA f32 reference of the same forward (numerical sanity check).
    x = jnp.transpose(x_nchw, (0, 2, 3, 1))
    y = jax.lax.conv_general_dilated(
        x, wconv, window_strides=(1, 1), padding="SAME",
        dimension_numbers=("NHWC", "HWIO", "NHWC"),
        precision=jax.lax.Precision.HIGHEST)
    y = jnp.maximum(y + bconv.reshape(1, 1, 1, COUT), 0.0)
    feat = jnp.mean(y, axis=(1, 2))
    return jnp.dot(feat, wcls, precision=jax.lax.Precision.HIGHEST) + bcls


if __name__ == "__main__":
    key = jax.random.PRNGKey(0)
    kx, kp = jax.random.split(key)
    x = jax.random.normal(kx, (B, CIN, H, W), jnp.float32)   # NCHW like PyTorch
    wconv, bconv, wcls, bcls = init_params(kp)

    out = classification_wrapper_forward(x, wconv, bconv, wcls, bcls)
    out = jax.block_until_ready(out)
    assert out.shape == (B, PROJ) and out.dtype == jnp.float32

    ref = reference_forward(x, wconv, bconv, wcls, bcls)
    max_err = float(jnp.max(jnp.abs(out - ref)))
    assert jnp.allclose(out, ref, atol=2e-2, rtol=2e-2), max_err
    print("KERNEL_OK")
</pallas_src>

<mosaic_0001>
module attributes {stable_mosaic.version = 11 : i64} {
  func.func @_cls_wrapper_kernel(%arg0: memref<512x64xbf16, #tpu.memory_space<vmem>>, %arg1: memref<64x32xbf16, #tpu.memory_space<vmem>>, %arg2: memref<33x128xf32, #tpu.memory_space<vmem>>, %arg3: memref<2x128xf32, #tpu.memory_space<vmem>>) attributes {dimension_semantics = [], scalar_prefetch = 0 : i64, scratch_operands = 0 : i64, tpu.core_type = #tpu.core_type<tc>} {
    %c0 = arith.constant 0 : index
    %c0_0 = arith.constant 0 : index
    %0 = vector.load %arg0[%c0, %c0_0] : memref<512x64xbf16, #tpu.memory_space<vmem>>, vector<512x64xbf16>
    %c0_1 = arith.constant 0 : index
    %c0_2 = arith.constant 0 : index
    %1 = vector.load %arg1[%c0_1, %c0_2] : memref<64x32xbf16, #tpu.memory_space<vmem>>, vector<64x32xbf16>
    %cst = arith.constant dense<0.000000e+00> : vector<512x32xf32>
    %2 = tpu.matmul %0, %1, %cst {dimension_numbers = #tpu.dot_dimension_numbers<[1], [0], [0], [1], [0, 0, 1, 1], [], []>} : vector<512x64xbf16>, vector<64x32xbf16>, vector<512x32xf32> -> vector<512x32xf32>
    %cst_3 = arith.constant 0.000000e+00 : f32
    %3 = vector.broadcast %cst_3 : f32 to vector<512x32xf32>
    %4 = arith.maximumf %2, %3 : vector<512x32xf32>
    %5 = vector.shape_cast %4 : vector<512x32xf32> to vector<2x256x32xf32>
    %cst_4 = arith.constant dense<0.000000e+00> : vector<2x32xf32>
    %6 = vector.multi_reduction <add>, %5, %cst_4 [1] : vector<2x256x32xf32> to vector<2x32xf32>
    %cst_5 = arith.constant 3.906250e-03 : f32
    %7 = vector.broadcast %cst_5 : f32 to vector<2x32xf32>
    %8 = arith.mulf %6, %7 : vector<2x32xf32>
    %c0_6 = arith.constant 0 : index
    %c0_7 = arith.constant 0 : index
    %9 = vector.load %arg2[%c0_6, %c0_7] : memref<33x128xf32, #tpu.memory_space<vmem>>, vector<32x128xf32>
    %c32 = arith.constant 32 : index
    %c0_8 = arith.constant 0 : index
    %10 = vector.load %arg2[%c32, %c0_8] : memref<33x128xf32, #tpu.memory_space<vmem>>, vector<1x128xf32>
    %cst_9 = arith.constant dense<0.000000e+00> : vector<2x128xf32>
    %11 = tpu.matmul %8, %9, %cst_9 {dimension_numbers = #tpu.dot_dimension_numbers<[1], [0], [0], [1], [0, 0, 1, 1], [], []>} : vector<2x32xf32>, vector<32x128xf32>, vector<2x128xf32> -> vector<2x128xf32>
    %12 = vector.broadcast %10 : vector<1x128xf32> to vector<2x128xf32>
    %13 = arith.addf %11, %12 : vector<2x128xf32>
    %c0_10 = arith.constant 0 : index
    %c0_11 = arith.constant 0 : index
    %14 = vector.load %arg3[%c0_10, %c0_11] : memref<2x128xf32, #tpu.memory_space<vmem>>, vector<2x128xf32>
    tpu.vector_store %arg3[%c0_10, %c0_11], %13 {strides = array<i32>} : memref<2x128xf32, #tpu.memory_space<vmem>>, vector<2x128xf32>,
    return
  }
}

</mosaic_0001>

<bundles_post_ra>
// kernel: classification_wrapper_forward.2
= control target key start
LH: loop header
LB: loop body
LE: loop exit
PB: predicated region body
PF: predicated region fallthrough
CT: control target
= control target key end

     0   :  { %s4529_s0 = inlined_call_operand.vmem [shape: bf16[512,36], index: 0, kind: input, shape index: {}]   ;;  %s4530_s1 = inlined_call_operand.<no memory space> [shape: bf16[], index: 1, kind: input, shape index: {}]   ;;  %s4531_s2 = inlined_call_operand.vmem [shape: bf16[64], index: 2, kind: input, shape index: {}]   ;;  %s4532_s3 = inlined_call_operand.vmem [shape: bf16[64], index: 3, kind: input, shape index: {}]   ;;  %s4533_s4 = inlined_call_operand.vmem [shape: f32[1,128], index: 4, kind: input, shape index: {}]   ;;  %s4534_s5 = inlined_call_operand.<no memory space> [shape: f32[], index: 5, kind: input, shape index: {}]   ;;  %s4535_s6 = inlined_call_operand.vmem [shape: f32[32,128], index: 6, kind: input, shape index: {}]   ;;  %s4536_s7 = inlined_call_operand.vmem [shape: bf16[1,32], index: 7, kind: input, shape index: {}]   ;;  %s4537_s8 = inlined_call_operand.vmem [shape: bf16[36,32], index: 8, kind: input, shape index: {}]   ;;  %s4538_s9 = inlined_call_operand.hbm [shape: f32[2,128], index: 9, kind: output, shape index: {}]  }
   0x1   :  { %v14_v0 = vstv %s4530_s1  ;;  %v3728_v1 = vstv %s4534_s5 }
   0x2   :  { %v3730_v2 = vunpack.i.l.bf16 %v14_v0 }
   0x3   :  { %v2132_v3 = vld [vmem:[%s4531_s2] ss:$0 sm:$0xff]  ;;  %v108_v4 = vlaneseq  ;;  %v3392_v7 = vld [vmem:[%s4537_s8 + $0x10] sm:$0xf] }
   0x4   :  { %v3735_v5 = vunpack.i.l.bf16 %v2132_v3  ;;  %v2028_v6 = vld [vmem:[%s4536_s7] ss:$0 sm:$0x3] }
   0x5   :  { %v3743_v8 = vand.u32 127, %v108_v4  ;;  %v2198_v9 = vshrl.u32 %v108_v4, 7 }
   0x6   :  { %31 = vsyncpa [#allocation28], 0  ;;  %2139 = vbcast.lane.b32.xlu1 %v3735_v5, 272  ;;  %2052 = vbcast.lane.b32.xlu0 %v3735_v5, 256  ;;  %v2029_v10 = vunpack.i.l.bf16 %v2028_v6  ;;  %v2221_v12 = vunpack.c.l.bf16 %v3392_v7  ;;  %v105_v14 = vld [vmem:[%s4529_s0] sm:$0xff]   ;;  %vm2207_vm2 = vcmask 1043456  }
   0x7   :  { %v2199_v11 = vadd.s32 40, %v2198_v9  ;;  %v2225_v13 = vadd.s32 32, %v2198_v9  ;;  %v2325_v15 = vld [vmem:[%s4533_s4] sm:$0x1]  ;;  %vm111_vm0 = vcmp.lt.s32.totalorder %v3743_v8, 36  ;;  %vm2044_vm1 = vcmp.lt.s32.totalorder %v3743_v8, 32 }
   0x8   :  { %v118_v16 = vld [vmem:[%s4532_s3] ss:$0 sm:$0xff]  ;;  %v106_v17 = vunpack.c.l.bf16 %v105_v14  ;;  %v3327_v22 = vld [vmem:[%s4529_s0 + $0x8] sm:$0xff]   ;;  %v145_v29 = vunpack.c.h.bf16 %v105_v14  ;;  %v3329_v35 = vld [vmem:[%s4529_s0 + $0x10] sm:$0xff]   ;;  %v3668_v40 = vmov 0.0   ;;  %vm2629_vm6 = vcmask 523264  }
   0x9   :  { %vm2200_vm3 = vcmp.lt.s32.totalorder %v2199_v11, 41  ;;  %vm2226_vm4 = vcmp.lt.s32.totalorder %v2225_v13, 36  ;;  %vm2363_vm5 = vcmp.lt.s32.totalorder %v2225_v13, 33  ;;  %v3763_v21 = vunpack.i.l.bf16 %v118_v16  ;;  %v3331_v39 = vld [vmem:[%s4529_s0 + $0x18] sm:$0xff]   ;;  %v3333_v3 = vld [vmem:[%s4529_s0 + $0x20] sm:$0xff]  }
   0xa   :  { %2183 = vbcast.lane.b32.xlu1 %v3735_v5, 280  ;;  %2095 = vbcast.lane.b32.xlu0 %v3735_v5, 264  ;;  %v2201_v18 = vsel %vm2200_vm3, %v2029_v10, %v3730_v2  ;;  %v2227_v19 = vsel %vm2226_vm4, %v2221_v12, %v3730_v2  ;;  %v2364_v20 = vsel %vm2363_vm5, %v2325_v15, %v3728_v1  ;;  %v175_v31 = vunpack.c.l.bf16 %v3327_v22  ;;  %v3335_v10 = vld [vmem:[%s4529_s0 + $0x28] sm:$0xff]  }
   0xb   :  { %v3771_v23 = vsel %vm2044_vm1, %v2201_v18, %v3730_v2  ;;  %v2232_v24 = vsel %vm2044_vm1, %v2227_v19, %v3730_v2  ;;  %v2367_v25 = vmax.f32 %v3728_v1, %v2364_v20  ;;  %v112_v26 = vsel %vm111_vm0, %v106_v17, %v3730_v2 }
   0xc   :  { %v2208_v27 = vsel %vm2207_vm2, %v3771_v23, %v3730_v2  ;;  %v125_v28 = vmax.f32 %v112_v26, %v3763_v21  ;;  %v205_v32 = vunpack.c.h.bf16 %v3327_v22  ;;  %v151_v34 = vsel %vm111_vm0, %v145_v29, %v3730_v2 }
   0xd   :  { %v2209_v30 = vrot.slane %v2208_v27, 4  ;;  %2371 = vst [vmem:[#allocation31 + $0x20] sm:$0xff] %v2367_v25  ;;  %v154_v37 = vmax.f32 %v151_v34, %v3763_v21  ;;  %v181_v38 = vsel %vm111_vm0, %v175_v31, %v3730_v2  ;;  %v235_v44 = vunpack.c.l.bf16 %v3329_v35 }
   0xe   :  { %2264 = vbcast.lane.b32.xlu1 %v3735_v5, 296  ;;  %2240 = vbcast.lane.b32.xlu0 %v3735_v5, 288  ;;  %v129_v33 = vmax.f32 %v125_v28, %v3735_v5  ;;  %v184_v42 = vmax.f32 %v181_v38, %v3763_v21  ;;  %v211_v43 = vsel %vm111_vm0, %v205_v32, %v3730_v2  ;;  %v265_v47 = vunpack.c.h.bf16 %v3329_v35 }
   0xf   :  { %v3793_v36 = vmax.f32 %v2232_v24, %v2209_v30  ;;  %v158_v45 = vmax.f32 %v154_v37, %v3735_v5  ;;  %v214_v46 = vmax.f32 %v211_v43, %v3763_v21  ;;  %v295_v48 = vunpack.c.l.bf16 %v3331_v39 }
  0x10   :  { %v131_v41 = vpack.c.bf16 %v3668_v40, %v129_v33  ;;  %v188_v49 = vmax.f32 %v184_v42, %v3735_v5  ;;  %v241_v50 = vsel %vm111_vm0, %v235_v44, %v3730_v2  ;;  %v325_v51 = vunpack.c.h.bf16 %v3331_v39  ;;  %v3337_v33 = vld [vmem:[%s4529_s0 + $0x30] sm:$0xff]   ;;  %v3339_v39 = vld [vmem:[%s4529_s0 + $0x38] sm:$0xff]  }
  0x11   :  { %v161_v52 = vpack.c.bf16 %v3668_v40, %v158_v45  ;;  %v218_v53 = vmax.f32 %v214_v46, %v3735_v5  ;;  %v244_v54 = vmax.f32 %v241_v50, %v3763_v21  ;;  %v271_v55 = vsel %vm111_vm0, %v265_v47, %v3730_v2 }
  0x12   :  { %2306 = vbcast.lane.b32.xlu1 %v3735_v5, 312  ;;  %2285 = vbcast.lane.b32.xlu0 %v3735_v5, 304  ;;  %133 = vst [vmem:[#allocation29] sm:$0xf] %v131_v41  ;;  %v191_v56 = vpack.c.bf16 %v3668_v40, %v188_v49  ;;  %v274_v57 = vmax.f32 %v271_v55, %v3763_v21  ;;  %v355_v9 = vunpack.c.l.bf16 %v3333_v3  ;;  %v385_v12 = vunpack.c.h.bf16 %v3333_v3 }
  0x13   :  { %v301_v58 = vsel %vm111_vm0, %v295_v48, %v3730_v2  ;;  %v331_v59 = vsel %vm111_vm0, %v325_v51, %v3730_v2  ;;  %163 = vst [vmem:[#allocation29 + $0x4] sm:$0xf] %v161_v52  ;;  %v221_v60 = vpack.c.bf16 %v3668_v40, %v218_v53  ;;  %v248_v61 = vmax.f32 %v244_v54, %v3735_v5 }
  0x14   :  { %v304_v62 = vmax.f32 %v301_v58, %v3763_v21  ;;  %v334_v63 = vmax.f32 %v331_v59, %v3763_v21  ;;  %193 = vst [vmem:[#allocation29 + $0x8] sm:$0xf] %v191_v56  ;;  %v278_v0 = vmax.f32 %v274_v57, %v3735_v5  ;;  %v415_v13 = vunpack.c.l.bf16 %v3335_v10  ;;  %v3341_v57 = vld [vmem:[%s4529_s0 + $0x40] sm:$0xff]  }
  0x15   :  { %223 = vst [vmem:[#allocation29 + $0xc] sm:$0xf] %v221_v60  ;;  %v251_v4 = vpack.c.bf16 %v3668_v40, %v248_v61  ;;  %v445_v14 = vunpack.c.h.bf16 %v3335_v10  ;;  %v361_v17 = vsel %vm111_vm0, %v355_v9, %v3730_v2  ;;  %v391_v19 = vsel %vm111_vm0, %v385_v12, %v3730_v2 }
  0x16   :  { %v308_v6 = vmax.f32 %v304_v62, %v3735_v5  ;;  %v338_v7 = vmax.f32 %v334_v63, %v3735_v5  ;;  %v281_v11 = vpack.c.bf16 %v3668_v40, %v278_v0  ;;  %v364_v18 = vmax.f32 %v361_v17, %v3763_v21  ;;  %v3343_v62 = vld [vmem:[%s4529_s0 + $0x48] sm:$0xff]  }
  0x17   :  { %253 = vst [vmem:[#allocation29 + $0x10] sm:$0xf] %v251_v4  ;;  %v421_v20 = vsel %vm111_vm0, %v415_v13, %v3730_v2  ;;  %v451_v22 = vsel %vm111_vm0, %v445_v14, %v3730_v2  ;;  %v394_v24 = vmax.f32 %v391_v19, %v3763_v21  ;;  %v475_v38 = vunpack.c.l.bf16 %v3337_v33  ;;  %v3345_v19 = vld [vmem:[%s4529_s0 + $0x50] sm:$0xff]  }
  0x18   :  { %v311_v15 = vpack.c.bf16 %v3668_v40, %v308_v6  ;;  %v341_v16 = vpack.c.bf16 %v3668_v40, %v338_v7  ;;  %283 = vst [vmem:[#allocation29 + $0x14] sm:$0xf] %v281_v11  ;;  %v424_v25 = vmax.f32 %v421_v20, %v3763_v21  ;;  %v454_v26 = vmax.f32 %v451_v22, %v3763_v21 }
  0x19   :  { %v368_v28 = vmax.f32 %v364_v18, %v3735_v5  ;;  %v398_v29 = vmax.f32 %v394_v24, %v3735_v5  ;;  %v505_v41 = vunpack.c.h.bf16 %v3337_v33  ;;  %v535_v42 = vunpack.c.l.bf16 %v3339_v39 }
  0x1a   :  { %313 = vst [vmem:[#allocation29 + $0x18] sm:$0xf] %v311_v15  ;;  %343 = vst [vmem:[#allocation29 + $0x1c] sm:$0xf] %v341_v16  ;;  %v3612_v27 = vld [vmem:[#allocation29] sm:$0xff]   ;;  %v428_v30 = vmax.f32 %v424_v25, %v3735_v5  ;;  %v458_v31 = vmax.f32 %v454_v26, %v3735_v5  ;;  %v565_v43 = vunpack.c.h.bf16 %v3339_v39  ;;  %v481_v44 = vsel %vm111_vm0, %v475_v38, %v3730_v2  ;;  %v3347_v26 = vld [vmem:[%s4529_s0 + $0x58] sm:$0xff]  }
  0x1b   :  { %3515 = vmatprep.mubr.msk.bf16.mxu0 %vm2629_vm6, %v3612_v27  ;;  %v371_v32 = vpack.c.bf16 %v3668_v40, %v368_v28  ;;  %v401_v34 = vpack.c.bf16 %v3668_v40, %v398_v29  ;;  %v484_v45 = vmax.f32 %v481_v44, %v3763_v21  ;;  %v511_v46 = vsel %vm111_vm0, %v505_v41, %v3730_v2 }
  0x1c   :  { %v431_v35 = vpack.c.bf16 %v3668_v40, %v428_v30  ;;  %v461_v37 = vpack.c.bf16 %v3668_v40, %v458_v31  ;;  %v541_v47 = vsel %vm111_vm0, %v535_v42, %v3730_v2  ;;  %v571_v48 = vsel %vm111_vm0, %v565_v43, %v3730_v2 }
  0x1d   :  { %373 = vst [vmem:[#allocation29 + $0x20] sm:$0xf] %v371_v32  ;;  %403 = vst [vmem:[#allocation29 + $0x24] sm:$0xf] %v401_v34  ;;  %v514_v49 = vmax.f32 %v511_v46, %v3763_v21  ;;  %v544_v50 = vmax.f32 %v541_v47, %v3763_v21  ;;  %v574_v51 = vmax.f32 %v571_v48, %v3763_v21  ;;  %v595_v61 = vunpack.c.l.bf16 %v3341_v57 }
  0x1e   :  { %433 = vst [vmem:[#allocation29 + $0x28] sm:$0xf] %v431_v35  ;;  %463 = vst [vmem:[#allocation29 + $0x2c] sm:$0xf] %v461_v37  ;;  %v488_v52 = vmax.f32 %v484_v45, %v3735_v5  ;;  %v625_v63 = vunpack.c.h.bf16 %v3341_v57  ;;  %v655_v0 = vunpack.c.l.bf16 %v3343_v62  ;;  %v685_v3 = vunpack.c.h.bf16 %v3343_v62  ;;  %v3349_v45 = vld [vmem:[%s4529_s0 + $0x60] sm:$0xff]  }
  0x1f   :  { %v518_v53 = vmax.f32 %v514_v49, %v3735_v5  ;;  %v548_v54 = vmax.f32 %v544_v50, %v3735_v5  ;;  %v578_v55 = vmax.f32 %v574_v51, %v3735_v5  ;;  %v601_v4 = vsel %vm111_vm0, %v595_v61, %v3730_v2  ;;  %v3351_v50 = vld [vmem:[%s4529_s0 + $0x68] sm:$0xff]  }
  0x20   :  { %v491_v56 = vpack.c.bf16 %v3668_v40, %v488_v52  ;;  %v604_v6 = vmax.f32 %v601_v4, %v3763_v21  ;;  %v631_v7 = vsel %vm111_vm0, %v625_v63, %v3730_v2  ;;  %v661_v9 = vsel %vm111_vm0, %v655_v0, %v3730_v2 }
  0x21   :  { %v521_v58 = vpack.c.bf16 %v3668_v40, %v518_v53  ;;  %v551_v59 = vpack.c.bf16 %v3668_v40, %v548_v54  ;;  %v581_v60 = vpack.c.bf16 %v3668_v40, %v578_v55  ;;  %v691_v10 = vsel %vm111_vm0, %v685_v3, %v3730_v2 }
  0x22   :  { %493 = vst [vmem:[#allocation29 + $0x30] sm:$0xf] %v491_v56  ;;  %v634_v11 = vmax.f32 %v631_v7, %v3763_v21  ;;  %v664_v12 = vmax.f32 %v661_v9, %v3763_v21  ;;  %v694_v13 = vmax.f32 %v691_v10, %v3763_v21  ;;  %v608_v14 = vmax.f32 %v604_v6, %v3735_v5  ;;  %v3353_v6 = vld [vmem:[%s4529_s0 + $0x70] sm:$0xff]  }
  0x23   :  { %523 = vst [vmem:[#allocation29 + $0x34] sm:$0xf] %v521_v58  ;;  %553 = vst [vmem:[#allocation29 + $0x38] sm:$0xf] %v551_v59  ;;  %v715_v25 = vunpack.c.l.bf16 %v3345_v19  ;;  %v745_v27 = vunpack.c.h.bf16 %v3345_v19  ;;  %v775_v28 = vunpack.c.l.bf16 %v3347_v26  ;;  %v805_v29 = vunpack.c.h.bf16 %v3347_v26 }
  0x24   :  { %583 = vst [vmem:[#allocation29 + $0x3c] sm:$0xf] %v581_v60  ;;  %v638_v15 = vmax.f32 %v634_v11, %v3735_v5  ;;  %v668_v16 = vmax.f32 %v664_v12, %v3735_v5  ;;  %v698_v17 = vmax.f32 %v694_v13, %v3735_v5  ;;  %v611_v18 = vpack.c.bf16 %v3668_v40, %v608_v14  ;;  %v3355_v12 = vld [vmem:[%s4529_s0 + $0x78] sm:$0xff]  }
  0x25   :  { %v721_v30 = vsel %vm111_vm0, %v715_v25, %v3730_v2  ;;  %v751_v32 = vsel %vm111_vm0, %v745_v27, %v3730_v2  ;;  %v781_v33 = vsel %vm111_vm0, %v775_v28, %v3730_v2  ;;  %v811_v34 = vsel %vm111_vm0, %v805_v29, %v3730_v2 }
  0x26   :  { %v641_v20 = vpack.c.bf16 %v3668_v40, %v638_v15  ;;  %v671_v22 = vpack.c.bf16 %v3668_v40, %v668_v16  ;;  %v701_v24 = vpack.c.bf16 %v3668_v40, %v698_v17  ;;  %613 = vst [vmem:[#allocation29 + $0x40] sm:$0xf] %v611_v18  ;;  %v724_v31 = vmax.f32 %v721_v30, %v3763_v21 }
  0x27   :  { %v754_v35 = vmax.f32 %v751_v32, %v3763_v21  ;;  %v784_v37 = vmax.f32 %v781_v33, %v3763_v21  ;;  %v814_v38 = vmax.f32 %v811_v34, %v3763_v21  ;;  %v835_v49 = vunpack.c.l.bf16 %v3349_v45 }
  0x28   :  { %643 = vst [vmem:[#allocation29 + $0x44] sm:$0xf] %v641_v20  ;;  %673 = vst [vmem:[#allocation29 + $0x48] sm:$0xf] %v671_v22  ;;  %v728_v39 = vmax.f32 %v724_v31, %v3735_v5  ;;  %v865_v51 = vunpack.c.h.bf16 %v3349_v45  ;;  %v895_v52 = vunpack.c.l.bf16 %v3351_v50  ;;  %v925_v53 = vunpack.c.h.bf16 %v3351_v50  ;;  %v3357_v31 = vld [vmem:[%s4529_s0 + $0x80] sm:$0xff]   ;;  %v3361_v50 = vld [vmem:[%s4529_s0 + $0x90] sm:$0xff]  }
  0x29   :  { %703 = vst [vmem:[#allocation29 + $0x4c] sm:$0xf] %v701_v24  ;;  %v758_v41 = vmax.f32 %v754_v35, %v3735_v5  ;;  %v788_v42 = vmax.f32 %v784_v37, %v3735_v5  ;;  %v818_v43 = vmax.f32 %v814_v38, %v3735_v5  ;;  %v841_v54 = vsel %vm111_vm0, %v835_v49, %v3730_v2  ;;  %v3359_v37 = vld [vmem:[%s4529_s0 + $0x88] sm:$0xff]  }
  0x2a   :  { %v731_v44 = vpack.c.bf16 %v3668_v40, %v728_v39  ;;  %v844_v55 = vmax.f32 %v841_v54, %v3763_v21  ;;  %v871_v56 = vsel %vm111_vm0, %v865_v51, %v3730_v2  ;;  %v901_v57 = vsel %vm111_vm0, %v895_v52, %v3730_v2  ;;  %v3363_v54 = vld [vmem:[%s4529_s0 + $0x98] sm:$0xff]  }
  0x2b   :  { %v761_v46 = vpack.c.bf16 %v3668_v40, %v758_v41  ;;  %v791_v47 = vpack.c.bf16 %v3668_v40, %v788_v42  ;;  %v821_v48 = vpack.c.bf16 %v3668_v40, %v818_v43  ;;  %v931_v58 = vsel %vm111_vm0, %v925_v53, %v3730_v2 }
  0x2c   :  { %733 = vst [vmem:[#allocation29 + $0x50] sm:$0xf] %v731_v44  ;;  %v874_v59 = vmax.f32 %v871_v56, %v3763_v21  ;;  %v904_v60 = vmax.f32 %v901_v57, %v3763_v21  ;;  %v934_v61 = vmax.f32 %v931_v58, %v3763_v21  ;;  %v848_v62 = vmax.f32 %v844_v55, %v3735_v5 }
  0x2d   :  { %763 = vst [vmem:[#allocation29 + $0x54] sm:$0xf] %v761_v46  ;;  %793 = vst [vmem:[#allocation29 + $0x58] sm:$0xf] %v791_v47  ;;  %v955_v11 = vunpack.c.l.bf16 %v3353_v6  ;;  %v985_v13 = vunpack.c.h.bf16 %v3353_v6  ;;  %v1015_v14 = vunpack.c.l.bf16 %v3355_v12  ;;  %v1045_v15 = vunpack.c.h.bf16 %v3355_v12  ;;  %v4067_v6 = vld [vmem:[%s4537_s8 + $0x8] sm:$0xff]  }
  0x2e   :  { %823 = vst [vmem:[#allocation29 + $0x5c] sm:$0xf] %v821_v48  ;;  %v878_v63 = vmax.f32 %v874_v59, %v3735_v5  ;;  %v908_v0 = vmax.f32 %v904_v60, %v3735_v5  ;;  %v938_v3 = vmax.f32 %v934_v61, %v3735_v5  ;;  %v851_v4 = vpack.c.bf16 %v3668_v40, %v848_v62 }
  0x2f   :  { %v961_v16 = vsel %vm111_vm0, %v955_v11, %v3730_v2  ;;  %v991_v18 = vsel %vm111_vm0, %v985_v13, %v3730_v2  ;;  %v1021_v19 = vsel %vm111_vm0, %v1015_v14, %v3730_v2  ;;  %v1051_v20 = vsel %vm111_vm0, %v1045_v15, %v3730_v2  ;;  %v4079_v11 = vld [vmem:[%s4537_s8] sm:$0xff]  }
  0x30   :  { %v881_v7 = vpack.c.bf16 %v3668_v40, %v878_v63  ;;  %v911_v9 = vpack.c.bf16 %v3668_v40, %v908_v0  ;;  %v941_v10 = vpack.c.bf16 %v3668_v40, %v938_v3  ;;  %853 = vst [vmem:[#allocation29 + $0x60] sm:$0xf] %v851_v4  ;;  %v964_v17 = vmax.f32 %v961_v16, %v3763_v21 }
  0x31   :  { %v994_v22 = vmax.f32 %v991_v18, %v3763_v21  ;;  %v1024_v24 = vmax.f32 %v1021_v19, %v3763_v21  ;;  %v1054_v25 = vmax.f32 %v1051_v20, %v3763_v21  ;;  %v1075_v35 = vunpack.c.l.bf16 %v3357_v31  ;;  %v3365_v20 = vld [vmem:[%s4529_s0 + $0xa0] sm:$0xff]  }
  0x32   :  { %883 = vst [vmem:[#allocation29 + $0x64] sm:$0xf] %v881_v7  ;;  %913 = vst [vmem:[#allocation29 + $0x68] sm:$0xf] %v911_v9  ;;  %v968_v26 = vmax.f32 %v964_v17, %v3735_v5  ;;  %v1105_v38 = vunpack.c.h.bf16 %v3357_v31  ;;  %v1135_v39 = vunpack.c.l.bf16 %v3359_v37  ;;  %v1165_v41 = vunpack.c.h.bf16 %v3359_v37 }
  0x33   :  { %943 = vst [vmem:[#allocation29 + $0x6c] sm:$0xf] %v941_v10  ;;  %v998_v27 = vmax.f32 %v994_v22, %v3735_v5  ;;  %v1028_v28 = vmax.f32 %v1024_v24, %v3735_v5  ;;  %v1058_v29 = vmax.f32 %v1054_v25, %v3735_v5  ;;  %v1081_v42 = vsel %vm111_vm0, %v1075_v35, %v3730_v2 }
  0x34   :  { %v971_v30 = vpack.c.bf16 %v3668_v40, %v968_v26  ;;  %v1084_v43 = vmax.f32 %v1081_v42, %v3763_v21  ;;  %v1111_v44 = vsel %vm111_vm0, %v1105_v38, %v3730_v2  ;;  %v1141_v45 = vsel %vm111_vm0, %v1135_v39, %v3730_v2 }
  0x35   :  { %v1001_v32 = vpack.c.bf16 %v3668_v40, %v998_v27  ;;  %v1031_v33 = vpack.c.bf16 %v3668_v40, %v1028_v28  ;;  %v1061_v34 = vpack.c.bf16 %v3668_v40, %v1058_v29  ;;  %v1171_v46 = vsel %vm111_vm0, %v1165_v41, %v3730_v2  ;;  %v3367_v27 = vld [vmem:[%s4529_s0 + $0xa8] sm:$0xff]  }
  0x36   :  { %973 = vst [vmem:[#allocation29 + $0x70] sm:$0xf] %v971_v30  ;;  %v1114_v47 = vmax.f32 %v1111_v44, %v3763_v21  ;;  %v1144_v48 = vmax.f32 %v1141_v45, %v3763_v21  ;;  %v1174_v49 = vmax.f32 %v1171_v46, %v3763_v21  ;;  %v1088_v51 = vmax.f32 %v1084_v43, %v3735_v5 }
  0x37   :  { %1003 = vst [vmem:[#allocation29 + $0x74] sm:$0xf] %v1001_v32  ;;  %1033 = vst [vmem:[#allocation29 + $0x78] sm:$0xf] %v1031_v33  ;;  %v1195_v52 = vunpack.c.l.bf16 %v3361_v50  ;;  %v1225_v53 = vunpack.c.h.bf16 %v3361_v50  ;;  %v1255_v58 = vunpack.c.l.bf16 %v3363_v54  ;;  %v1285_v62 = vunpack.c.h.bf16 %v3363_v54 }
  0x38   :  { %1063 = vst [vmem:[#allocation29 + $0x7c] sm:$0xf] %v1061_v34  ;;  %v1118_v55 = vmax.f32 %v1114_v47, %v3735_v5  ;;  %v1148_v56 = vmax.f32 %v1144_v48, %v3735_v5  ;;  %v1178_v57 = vmax.f32 %v1174_v49, %v3735_v5  ;;  %v1091_v59 = vpack.c.bf16 %v3668_v40, %v1088_v51  ;;  %v3369_v48 = vld [vmem:[%s4529_s0 + $0xb0] sm:$0xff]  }
  0x39   :  { %v1201_v60 = vsel %vm111_vm0, %v1195_v52, %v3730_v2  ;;  %v1231_v61 = vsel %vm111_vm0, %v1225_v53, %v3730_v2  ;;  %v1261_v9 = vsel %vm111_vm0, %v1255_v58, %v3730_v2  ;;  %v1291_v10 = vsel %vm111_vm0, %v1285_v62, %v3730_v2  ;;  %v3371_v53 = vld [vmem:[%s4529_s0 + $0xb8] sm:$0xff]   ;;  %v3373_v58 = vld [vmem:[%s4529_s0 + $0xc0] sm:$0xff]  }
  0x3a   :  { %v1121_v63 = vpack.c.bf16 %v3668_v40, %v1118_v55  ;;  %v1151_v0 = vpack.c.bf16 %v3668_v40, %v1148_v56  ;;  %v1181_v3 = vpack.c.bf16 %v3668_v40, %v1178_v57  ;;  %v1204_v4 = vmax.f32 %v1201_v60, %v3763_v21  ;;  %1093 = vst [vmem:[#allocation29 + $0x80] sm:$0xf] %v1091_v59 }
  0x3b   :  { %v1234_v7 = vmax.f32 %v1231_v61, %v3763_v21  ;;  %v1264_v13 = vmax.f32 %v1261_v9, %v3763_v21  ;;  %v1294_v14 = vmax.f32 %v1291_v10, %v3763_v21  ;;  %v2120_v16 = vunpack.c.l.bf16 %v4067_v6 }
  0x3c   :  { %1123 = vst [vmem:[#allocation29 + $0x84] sm:$0xf] %v1121_v63  ;;  %1153 = vst [vmem:[#allocation29 + $0x88] sm:$0xf] %v1151_v0  ;;  %v1208_v12 = vmax.f32 %v1204_v4, %v3735_v5  ;;  %v2034_v22 = vunpack.c.l.bf16 %v4079_v11  ;;  %v1315_v25 = vunpack.c.l.bf16 %v3365_v20  ;;  %v1345_v26 = vunpack.c.h.bf16 %v3365_v20  ;;  %v3375_v63 = vld [vmem:[%s4529_s0 + $0xc8] sm:$0xff]  }
  0x3d   :  { %1183 = vst [vmem:[#allocation29 + $0x8c] sm:$0xf] %v1181_v3  ;;  %v1238_v15 = vmax.f32 %v1234_v7, %v3735_v5  ;;  %v1268_v18 = vmax.f32 %v1264_v13, %v3735_v5  ;;  %v1298_v19 = vmax.f32 %v1294_v14, %v3735_v5  ;;  %v1375_v30 = vunpack.c.l.bf16 %v3367_v27 }
  0x3e   :  { %v1211_v17 = vpack.c.bf16 %v3668_v40, %v1208_v12  ;;  %v1405_v31 = vunpack.c.h.bf16 %v3367_v27  ;;  %v1321_v32 = vsel %vm111_vm0, %v1315_v25, %v3730_v2  ;;  %v1351_v33 = vsel %vm111_vm0, %v1345_v26, %v3730_v2 }
  0x3f   :  { %v1241_v24 = vpack.c.bf16 %v3668_v40, %v1238_v15  ;;  %v1271_v28 = vpack.c.bf16 %v3668_v40, %v1268_v18  ;;  %v1301_v29 = vpack.c.bf16 %v3668_v40, %v1298_v19  ;;  %v1324_v34 = vmax.f32 %v1321_v32, %v3763_v21 }
  0x40   :  { %1213 = vst [vmem:[#allocation29 + $0x90] sm:$0xf] %v1211_v17  ;;  %v1354_v35 = vmax.f32 %v1351_v33, %v3763_v21  ;;  %v1381_v37 = vsel %vm111_vm0, %v1375_v30, %v3730_v2  ;;  %v1411_v38 = vsel %vm111_vm0, %v1405_v31, %v3730_v2  ;;  %v2164_v39 = vunpack.c.h.bf16 %v4067_v6  ;;  %v3379_v30 = vld [vmem:[%s4529_s0 + $0xd8] sm:$0xff]  }
  0x41   :  { %1243 = vst [vmem:[#allocation29 + $0x94] sm:$0xf] %v1241_v24  ;;  %1273 = vst [vmem:[#allocation29 + $0x98] sm:$0xf] %v1271_v28  ;;  %v2076_v41 = vunpack.c.h.bf16 %v4079_v11  ;;  %v1384_v42 = vmax.f32 %v1381_v37, %v3763_v21  ;;  %v1414_v43 = vmax.f32 %v1411_v38, %v3763_v21  ;;  %v4120_v44 = vsel %vm2044_vm1, %v2120_v16, %v3730_v2 }
  0x42   :  { %1303 = vst [vmem:[#allocation29 + $0x9c] sm:$0xf] %v1301_v29  ;;  %v4125_v45 = vsel %vm2044_vm1, %v2034_v22, %v3730_v2  ;;  %v1328_v46 = vmax.f32 %v1324_v34, %v3735_v5  ;;  %v1358_v47 = vmax.f32 %v1354_v35, %v3735_v5  ;;  %v1435_v51 = vunpack.c.l.bf16 %v3369_v48  ;;  %v3377_v29 = vld [vmem:[%s4529_s0 + $0xd0] sm:$0xff]  }
  0x43   :  { %v1388_v49 = vmax.f32 %v1384_v42, %v3735_v5  ;;  %v1418_v50 = vmax.f32 %v1414_v43, %v3735_v5  ;;  %v1465_v52 = vunpack.c.h.bf16 %v3369_v48  ;;  %v1495_v56 = vunpack.c.l.bf16 %v3371_v53 }
  0x44   :  { %v1331_v54 = vpack.c.bf16 %v3668_v40, %v1328_v46  ;;  %v1361_v55 = vpack.c.bf16 %v3668_v40, %v1358_v47  ;;  %v1525_v57 = vunpack.c.h.bf16 %v3371_v53  ;;  %v1441_v61 = vsel %vm111_vm0, %v1435_v51, %v3730_v2  ;;  %v3381_v53 = vld [vmem:[%s4529_s0 + $0xe0] sm:$0xff]  }
  0x45   :  { %v1391_v59 = vpack.c.bf16 %v3668_v40, %v1388_v49  ;;  %v1421_v60 = vpack.c.bf16 %v3668_v40, %v1418_v50  ;;  %v1471_v62 = vsel %vm111_vm0, %v1465_v52, %v3730_v2  ;;  %v1444_v3 = vmax.f32 %v1441_v61, %v3763_v21 }
  0x46   :  { %1333 = vst [vmem:[#allocation29 + $0xa0] sm:$0xf] %v1331_v54  ;;  %1363 = vst [vmem:[#allocation29 + $0xa4] sm:$0xf] %v1361_v55  ;;  %v1474_v4 = vmax.f32 %v1471_v62, %v3763_v21  ;;  %v1501_v7 = vsel %vm111_vm0, %v1495_v56, %v3730_v2  ;;  %v1531_v9 = vsel %vm111_vm0, %v1525_v57, %v3730_v2  ;;  %v1555_v13 = vunpack.c.l.bf16 %v3373_v58 }
  0x47   :  { %1393 = vst [vmem:[#allocation29 + $0xa8] sm:$0xf] %v1391_v59  ;;  %1423 = vst [vmem:[#allocation29 + $0xac] sm:$0xf] %v1421_v60  ;;  %v1504_v10 = vmax.f32 %v1501_v7, %v3763_v21  ;;  %v1534_v12 = vmax.f32 %v1531_v9, %v3763_v21  ;;  %v1585_v14 = vunpack.c.h.bf16 %v3373_v58  ;;  %v1448_v15 = vmax.f32 %v1444_v3, %v3735_v5  ;;  %v3383_v58 = vld [vmem:[%s4529_s0 + $0xe8] sm:$0xff]  }
  0x48   :  { %v3630_v0 = vld [vmem:[#allocation29 + $0x90] sm:$0xff]   ;;  %v1478_v16 = vmax.f32 %v1474_v4, %v3735_v5  ;;  %v1615_v17 = vunpack.c.l.bf16 %v3375_v63  ;;  %v1645_v18 = vunpack.c.h.bf16 %v3375_v63  ;;  %v1561_v22 = vsel %vm111_vm0, %v1555_v13, %v3730_v2 }
  0x49   :  { %3551 = vmatprep.mubr.msk.bf16.mxu1 %vm2629_vm6, %v3630_v0  ;;  %v1508_v19 = vmax.f32 %v1504_v10, %v3735_v5  ;;  %v1538_v20 = vmax.f32 %v1534_v12, %v3735_v5  ;;  %v1591_v24 = vsel %vm111_vm0, %v1585_v14, %v3730_v2  ;;  %v1451_v25 = vpack.c.bf16 %v3668_v40, %v1448_v15 }
  0x4a   :  { %v1481_v26 = vpack.c.bf16 %v3668_v40, %v1478_v16  ;;  %v1564_v27 = vmax.f32 %v1561_v22, %v3763_v21  ;;  %v1594_v28 = vmax.f32 %v1591_v24, %v3763_v21  ;;  %v1621_v33 = vsel %vm111_vm0, %v1615_v17, %v3730_v2  ;;  %v3385_v17 = vld [vmem:[%s4529_s0 + $0xf0] sm:$0xff]   ;;  %v3387_v24 = vld [vmem:[%s4529_s0 + $0xf8] sm:$0xff]  }
  0x4b   :  { %v1511_v31 = vpack.c.bf16 %v3668_v40, %v1508_v19  ;;  %v1541_v32 = vpack.c.bf16 %v3668_v40, %v1538_v20  ;;  %v1651_v34 = vsel %vm111_vm0, %v1645_v18, %v3730_v2  ;;  %1453 = vst [vmem:[#allocation29 + $0xb0] sm:$0xf] %v1451_v25  ;;  %v1624_v38 = vmax.f32 %v1621_v33, %v3763_v21 }
  0x4c   :  { %1483 = vst [vmem:[#allocation29 + $0xb4] sm:$0xf] %v1481_v26  ;;  %v1568_v35 = vmax.f32 %v1564_v27, %v3735_v5  ;;  %v1598_v37 = vmax.f32 %v1594_v28, %v3735_v5  ;;  %v1654_v42 = vmax.f32 %v1651_v34, %v3763_v21  ;;  %v1675_v43 = vunpack.c.l.bf16 %v3377_v29 }
  0x4d   :  { %1513 = vst [vmem:[#allocation29 + $0xb8] sm:$0xf] %v1511_v31  ;;  %1543 = vst [vmem:[#allocation29 + $0xbc] sm:$0xf] %v1541_v32  ;;  %v1705_v46 = vunpack.c.h.bf16 %v3377_v29  ;;  %v1735_v47 = vunpack.c.l.bf16 %v3379_v30  ;;  %v1765_v48 = vunpack.c.h.bf16 %v3379_v30  ;;  %v1628_v51 = vmax.f32 %v1624_v38, %v3735_v5 }
  0x4e   :  { %v1571_v49 = vpack.c.bf16 %v3668_v40, %v1568_v35  ;;  %v1601_v50 = vpack.c.bf16 %v3668_v40, %v1598_v37  ;;  %v1658_v52 = vmax.f32 %v1654_v42, %v3735_v5  ;;  %v1681_v54 = vsel %vm111_vm0, %v1675_v43, %v3730_v2 }
  0x4f   :  { %v1711_v55 = vsel %vm111_vm0, %v1705_v46, %v3730_v2  ;;  %v1741_v56 = vsel %vm111_vm0, %v1735_v47, %v3730_v2  ;;  %v1771_v57 = vsel %vm111_vm0, %v1765_v48, %v3730_v2  ;;  %v1631_v59 = vpack.c.bf16 %v3668_v40, %v1628_v51 }
  0x50   :  { %1573 = vst [vmem:[#allocation29 + $0xc0] sm:$0xf] %v1571_v49  ;;  %1603 = vst [vmem:[#allocation29 + $0xc4] sm:$0xf] %v1601_v50  ;;  %v1661_v60 = vpack.c.bf16 %v3668_v40, %v1658_v52  ;;  %v1684_v61 = vmax.f32 %v1681_v54, %v3763_v21  ;;  %v1714_v62 = vmax.f32 %v1711_v55, %v3763_v21  ;;  %v1795_v3 = vunpack.c.l.bf16 %v3381_v53 }
  0x51   :  { %v1744_v63 = vmax.f32 %v1741_v56, %v3763_v21  ;;  %v1774_v0 = vmax.f32 %v1771_v57, %v3763_v21  ;;  %v1825_v4 = vunpack.c.h.bf16 %v3381_v53  ;;  %1633 = vst [vmem:[#allocation29 + $0xc8] sm:$0xf] %v1631_v59  ;;  %v1855_v10 = vunpack.c.l.bf16 %v3383_v58 }
  0x52   :  { %1663 = vst [vmem:[#allocation29 + $0xcc] sm:$0xf] %v1661_v60  ;;  %v1688_v7 = vmax.f32 %v1684_v61, %v3735_v5  ;;  %v1718_v9 = vmax.f32 %v1714_v62, %v3735_v5  ;;  %v1885_v12 = vunpack.c.h.bf16 %v3383_v58  ;;  %v1801_v15 = vsel %vm111_vm0, %v1795_v3, %v3730_v2 }
  0x53   :  { %v1748_v13 = vmax.f32 %v1744_v63, %v3735_v5  ;;  %v1778_v14 = vmax.f32 %v1774_v0, %v3735_v5  ;;  %v1831_v16 = vsel %vm111_vm0, %v1825_v4, %v3730_v2  ;;  %v1804_v20 = vmax.f32 %v1801_v15, %v3763_v21 }
  0x54   :  { %v1691_v18 = vpack.c.bf16 %v3668_v40, %v1688_v7  ;;  %v1721_v19 = vpack.c.bf16 %v3668_v40, %v1718_v9  ;;  %v1834_v22 = vmax.f32 %v1831_v16, %v3763_v21  ;;  %v1861_v27 = vsel %vm111_vm0, %v1855_v10, %v3730_v2 }
  0x55   :  { %v1751_v25 = vpack.c.bf16 %v3668_v40, %v1748_v13  ;;  %v1781_v26 = vpack.c.bf16 %v3668_v40, %v1778_v14  ;;  %v1891_v28 = vsel %vm111_vm0, %v1885_v12, %v3730_v2  ;;  %v1808_v29 = vmax.f32 %v1804_v20, %v3735_v5 }
  0x56   :  { %1693 = vst [vmem:[#allocation29 + $0xd0] sm:$0xf] %v1691_v18  ;;  %1723 = vst [vmem:[#allocation29 + $0xd4] sm:$0xf] %v1721_v19  ;;  %v1838_v30 = vmax.f32 %v1834_v22, %v3735_v5  ;;  %v1864_v31 = vmax.f32 %v1861_v27, %v3763_v21  ;;  %v1894_v32 = vmax.f32 %v1891_v28, %v3763_v21  ;;  %v1915_v33 = vunpack.c.l.bf16 %v3385_v17 }
  0x57   :  { %1753 = vst [vmem:[#allocation29 + $0xd8] sm:$0xf] %v1751_v25  ;;  %1783 = vst [vmem:[#allocation29 + $0xdc] sm:$0xf] %v1781_v26  ;;  %v1945_v34 = vunpack.c.h.bf16 %v3385_v17  ;;  %v1975_v35 = vunpack.c.l.bf16 %v3387_v24  ;;  %v2005_v37 = vunpack.c.h.bf16 %v3387_v24  ;;  %v1811_v38 = vpack.c.bf16 %v3668_v40, %v1808_v29 }
  0x58   :  { %v1841_v42 = vpack.c.bf16 %v3668_v40, %v1838_v30  ;;  %v1868_v43 = vmax.f32 %v1864_v31, %v3735_v5  ;;  %v1898_v46 = vmax.f32 %v1894_v32, %v3735_v5  ;;  %v1921_v47 = vsel %vm111_vm0, %v1915_v33, %v3730_v2 }
  0x59   :  { %v1951_v48 = vsel %vm111_vm0, %v1945_v34, %v3730_v2  ;;  %v1981_v49 = vsel %vm111_vm0, %v1975_v35, %v3730_v2  ;;  %v2011_v50 = vsel %vm111_vm0, %v2005_v37, %v3730_v2  ;;  %1813 = vst [vmem:[#allocation29 + $0xe0] sm:$0xf] %v1811_v38  ;;  %v1924_v53 = vmax.f32 %v1921_v47, %v3763_v21  ;;  %v3613_v34 = vld [vmem:[#allocation29 + $0x8] sm:$0xff]   ;;  %v3631_v35 = vld [vmem:[#allocation29 + $0x98] sm:$0xff]   ;;  %v3614_v37 = vld [vmem:[#allocation29 + $0x10] sm:$0xff]  }
  0x5a   :  { %1843 = vst [vmem:[#allocation29 + $0xe4] sm:$0xf] %v1841_v42  ;;  %v1871_v51 = vpack.c.bf16 %v3668_v40, %v1868_v43  ;;  %v1901_v52 = vpack.c.bf16 %v3668_v40, %v1898_v46  ;;  %v1954_v54 = vmax.f32 %v1951_v48, %v3763_v21  ;;  %v1984_v55 = vmax.f32 %v1981_v49, %v3763_v21  ;;  %v3632_v38 = vld [vmem:[#allocation29 + $0xa0] sm:$0xff]   ;;  %v3615_v42 = vld [vmem:[#allocation29 + $0x18] sm:$0xff]   ;;  %v3633_v43 = vld [vmem:[#allocation29 + $0xa8] sm:$0xff]  }
  0x5b   :  { %v2014_v56 = vmax.f32 %v2011_v50, %v3763_v21  ;;  %v2175_v57 = vsel %vm2044_vm1, %v2164_v39, %v3730_v2  ;;  %v1928_v58 = vmax.f32 %v1924_v53, %v3735_v5  ;;  %v2143_v60 = vmax.f32 %v4120_v44, %v3730_v2  ;;  %v3616_v46 = vld [vmem:[#allocation29 + $0x20] sm:$0xff]   ;;  %v3634_v47 = vld [vmem:[#allocation29 + $0xb0] sm:$0xff]   ;;  %v3617_v48 = vld [vmem:[#allocation29 + $0x28] sm:$0xff]  }
  0x5c   :  { %1873 = vst [vmem:[#allocation29 + $0xe8] sm:$0xf] %v1871_v51  ;;  %1903 = vst [vmem:[#allocation29 + $0xec] sm:$0xf] %v1901_v52  ;;  %v1958_v59 = vmax.f32 %v1954_v54, %v3735_v5  ;;  %v2056_v61 = vmax.f32 %v4125_v45, %v3730_v2  ;;  %v1988_v21 = vmax.f32 %v1984_v55, %v3735_v5  ;;  %v3635_v49 = vld [vmem:[#allocation29 + $0xb8] sm:$0xff]   ;;  %v3618_v50 = vld [vmem:[#allocation29 + $0x30] sm:$0xff]  }
  0x5d   :  { %v2018_v62 = vmax.f32 %v2014_v56, %v3735_v5  ;;  %v2087_v6 = vsel %vm2044_vm1, %v2076_v41, %v3730_v2  ;;  %v2255_v39 = vsel %vm2207_vm2, %v3730_v2, %v3771_v23  ;;  %v1931_v63 = vpack.c.bf16 %v3668_v40, %v1928_v58  ;;  %v3636_v51 = vld [vmem:[#allocation29 + $0xc0] sm:$0xff]   ;;  %v3619_v52 = vld [vmem:[#allocation29 + $0x38] sm:$0xff]   ;;  %v3637_v53 = vld [vmem:[#allocation29 + $0xc8] sm:$0xff]  }
  0x5e   :  { %v1961_v44 = vpack.c.bf16 %v3668_v40, %v1958_v59  ;;  %v1991_v45 = vpack.c.bf16 %v3668_v40, %v1988_v21  ;;  %v2187_v4 = vmax.f32 %v2175_v57, %v3730_v2  ;;  %v2099_v41 = vmax.f32 %v2087_v6, %v3730_v2  ;;  %v3620_v54 = vld [vmem:[#allocation29 + $0x40] sm:$0xff]   ;;  %v3638_v55 = vld [vmem:[#allocation29 + $0xd0] sm:$0xff]   ;;  %v3621_v56 = vld [vmem:[#allocation29 + $0x48] sm:$0xff]  }
  0x5f   :  { %v2021_v0 = vpack.c.bf16 %v3668_v40, %v2018_v62  ;;  %1933 = vst [vmem:[#allocation29 + $0xf0] sm:$0xf] %v1931_v63  ;;  %v2256_v7 = vrot.slane %v2255_v39, 4  ;;  %v3639_v57 = vld [vmem:[#allocation29 + $0xd8] sm:$0xff]   ;;  %v3622_v58 = vld [vmem:[#allocation29 + $0x50] sm:$0xff]   ;;  %v3624_v21 = vld [vmem:[#allocation29 + $0x60] sm:$0xff]  }
  0x60   :  { %1963 = vst [vmem:[#allocation29 + $0xf4] sm:$0xf] %v1961_v44  ;;  %1993 = vst [vmem:[#allocation29 + $0xf8] sm:$0xf] %v1991_v45  ;;  %v3625_v6 = vld [vmem:[#allocation29 + $0x68] sm:$0xff]   ;;  %v3626_v63 = vld [vmem:[#allocation29 + $0x70] sm:$0xff]  }
  0x61   :  { %2023 = vst [vmem:[#allocation29 + $0xfc] sm:$0xf] %v2021_v0  ;;  %v2268_v15 = vmax.f32 %v3730_v2, %v2256_v7  ;;  %v3640_v59 = vld [vmem:[#allocation29 + $0xe0] sm:$0xff]   ;;  %v3627_v44 = vld [vmem:[#allocation29 + $0x78] sm:$0xff]   ;;  %v3629_v0 = vld [vmem:[#allocation29 + $0x88] sm:$0xff]   ;;  %vm3079_vm7 = vcmask 261120  }
  0x62   :  { %v3628_v45 = vld [vmem:[#allocation29 + $0x80] sm:$0xff]   ;;  %vm3670_vm8 = vmmov 0   ;;  %vm3231_vm9 = vcmask 1041409  }
  0x67   :  { %v3642_v62 = vld [vmem:[#allocation29 + $0xf0] sm:$0xff]  }
  0x68   :  { %v3643_v39 = vld [vmem:[#allocation29 + $0xf8] sm:$0xff]  }
  0x78   :  { %v2140_v3 = vpop.permute.xlu1 %2139  ;;  %v2053_v5 = vpop.permute.xlu0 %2052 }
  0x79   :  { %v2147_v8 = vmax.f32 %v2143_v60, %v2140_v3  ;;  %v2060_v11 = vmax.f32 %v2056_v61, %v2053_v5  ;;  %v3623_v60 = vld [vmem:[#allocation29 + $0x58] sm:$0xff]   ;;  %v3641_v61 = vld [vmem:[#allocation29 + $0xe8] sm:$0xff]  }
  0x7a   :  { %v2326_v3 = vld [vmem:[%s4535_s6] sm:$0xff]  ;;  %v3393_v5 = vld [vmem:[%s4535_s6 + $0x8] sm:$0xff] }
  0x7b   :  { %v2150_v23 = vpack.c.bf16 %v3668_v40, %v2147_v8  ;;  %v2062_v9 = vpack.c.bf16 %v3668_v40, %v2060_v11  ;;  %v2329_v8 = vmax.f32 %v2326_v3, %v3728_v1  ;;  %v2337_v11 = vmax.f32 %v3393_v5, %v3728_v1 }
  0x7c   :  { %v2184_v10 = vpop.permute.xlu1 %2183  ;;  %v2096_v12 = vpop.permute.xlu0 %2095 }
  0x7d   :  { %2152 = vst [vmem:[#allocation30 + $0x8] sm:$0xf] %v2150_v23  ;;  %2064 = vst [vmem:[#allocation30] sm:$0xf] %v2062_v9  ;;  %v2191_v13 = vmax.f32 %v2187_v4, %v2184_v10  ;;  %v2103_v14 = vmax.f32 %v2099_v41, %v2096_v12  ;;  %v3669_v4 = vmov 0.0|0.0   ;;  %v3591_v41 = vpack.c.bf16 %v2337_v11, %v2329_v8 }
  0x7f   :  { %v2194_v16 = vpack.c.bf16 %v3668_v40, %v2191_v13  ;;  %v2106_v17 = vpack.c.bf16 %v3668_v40, %v2103_v14 }
  0x80   :  { %v2265_v18 = vpop.permute.xlu1 %2264  ;;  %v2241_v19 = vpop.permute.xlu0 %2240 }
  0x81   :  { %2196 = vst [vmem:[#allocation30 + $0xc] sm:$0xf] %v2194_v16  ;;  %2108 = vst [vmem:[#allocation30 + $0x4] sm:$0xf] %v2106_v17  ;;  %v2272_v20 = vmax.f32 %v2268_v15, %v2265_v18  ;;  %v2248_v22 = vmax.f32 %v3793_v36, %v2241_v19 }
  0x83   :  { %v2275_v24 = vpack.c.bf16 %v3668_v40, %v2272_v20  ;;  %v2251_v25 = vpack.c.bf16 %v3668_v40, %v2248_v22 }
  0x84   :  { %v2307_v26 = vpop.permute.xlu1 %2306  ;;  %v2286_v27 = vpop.permute.xlu0 %2285 }
  0x85   :  { %2277 = vst [vmem:[#allocation30 + $0x14] sm:$0xf] %v2275_v24  ;;  %2253 = vst [vmem:[#allocation30 + $0x10] sm:$0xf] %v2251_v25  ;;  %v2314_v28 = vmax.f32 %v3730_v2, %v2307_v26  ;;  %v2293_v29 = vmax.f32 %v3730_v2, %v2286_v27 }
  0x87   :  { %v2317_v30 = vpack.c.bf16 %v3668_v40, %v2314_v28  ;;  %v2296_v31 = vpack.c.bf16 %v3668_v40, %v2293_v29 }
  0x88   :  { %v3608_v32 = vld [vmem:[#allocation30] sm:$0xff]   ;;  %v3609_v36 = vld [vmem:[#allocation30 + $0x8] sm:$0xff]  }
  0x89   :  { %2319 = vst [vmem:[#allocation30 + $0x1c] sm:$0xf] %v2317_v30  ;;  %2298 = vst [vmem:[#allocation30 + $0x18] sm:$0xf] %v2296_v31  ;;  %3507 = vmatprep.subr.bf16.mxu0 %v3608_v32  ;;  %3596 = vmatprep.subr.bf16.mxu1 %v3608_v32 }
  0x8a   :  { %3508 = vmatpush3.bf16.msra.mxu0 %v3608_v32  ;;  %3600 = vmatpush3.bf16.msra.mxu1 %v3608_v32 }
  0x8b   :  { %3509 = vmatprep.subr.bf16.mxu0 %v3609_v36  ;;  %3597 = vmatprep.subr.bf16.mxu1 %v3609_v36 }
  0x8c   :  { %v3610_v33 = vld [vmem:[#allocation30 + $0x10] sm:$0xff]  }
  0x8e   :  { %3510 = vmatpush3.bf16.msra.mxu0 %v3609_v36  ;;  %3601 = vmatpush3.bf16.msra.mxu1 %v3609_v36 }
  0x8f   :  { %3511 = vmatprep.subr.bf16.mxu0 %v3610_v33  ;;  %3598 = vmatprep.subr.bf16.mxu1 %v3610_v33 }
  0x90   :  { %v3611_v2 = vld [vmem:[#allocation30 + $0x18] sm:$0xff]  }
  0x92   :  { %3512 = vmatpush3.bf16.msra.mxu0 %v3610_v33  ;;  %3602 = vmatpush3.bf16.msra.mxu1 %v3610_v33 }
  0x93   :  { %3513 = vmatprep.subr.bf16.mxu0 %v3611_v2  ;;  %3599 = vmatprep.subr.bf16.mxu1 %v3611_v2 }
  0x96   :  { %3514 = vmatpush3.bf16.msra.mxu0 %v3611_v2  ;;  %3603 = vmatpush3.bf16.msra.mxu1 %v3611_v2 }
  0x97   :  { %3590 = vmatprep.subr.bf16.mxu1 %v3669_v4 }
  0x99   :  { %3516 = vmatmul.mubr.msk.bf16.vlgmr.msra.gmra.mrb[0].mxu0 %vm2629_vm6, %v3613_v34  ;;  %3552 = vmatmul.mubr.msk.bf16.vlgmr.msra.gmra.mrb[0].mxu1 %vm2629_vm6, %v3631_v35 }
  0x9a   :  { %3519 = vmatprep.mubr.msk.bf16.mxu0 %vm2629_vm6, %v3614_v37  ;;  %3555 = vmatprep.mubr.msk.bf16.mxu1 %vm2629_vm6, %v3632_v38 }
  0x9b   :  { %3592 = vmatpush3.bf16.msra.mxu1 %v3591_v41 }
  0x9c   :  { %3593 = vmatprep.subr.bf16.mxu1 %v3669_v4 }
  0xa1   :  { %3520 = vmatmul.mubr.msk.bf16.gmra.mrb[4].mxu0 %vm2629_vm6, %v3615_v42  ;;  %3556 = vmatmul.mubr.msk.bf16.gmra.mrb[4].mxu1 %vm2629_vm6, %v3633_v43 }
  0xa2   :  { %3523 = vmatprep.mubr.msk.bf16.mxu0 %vm2629_vm6, %v3616_v46  ;;  %3559 = vmatprep.mubr.msk.bf16.mxu1 %vm2629_vm6, %v3634_v47  ;;  %v3394_v46 = vld [vmem:[%s4535_s6 + $0x10] sm:$0xff]  ;;  %v3395_v47 = vld [vmem:[%s4535_s6 + $0x18] sm:$0xff]  ;;  %s3671_s6 = smov [#allocation27]  }
  0xa3   :  { %s3312_s15 = sshll.u32 %s3671_s6, 4  ;;  %s3313_s15 = int_to_ptr.vmem [resolvable:$true] %s3312_s15 }
  0xa4   :  { %s3644_s16 = scalar_lea.vmem %s3313_s15, 32  ;;  %p3649_p1 = scmp.lt.s32.totalorder %s3313_s15, %s3313_s15 }
  0xa5   :  { %p3645_p0 = scmp.ne.s32.totalorder %s3313_s15, %s3644_s16  ;;  %p3650_p2 = scmp.lt.s32.totalorder %s3644_s16, %s3644_s16 }
  0xa7   :  { %p3651_p3 = por %p3650_p2, %p3649_p1 }
  0xa9   :  { %3524 = vmatmul.mubr.msk.bf16.gmra.mrb[8].mxu0 %vm2629_vm6, %v3617_v48  ;;  %3560 = vmatmul.mubr.msk.bf16.gmra.mrb[8].mxu1 %vm2629_vm6, %v3635_v49  ;;  %p3652_p4 = pnand %p3651_p3, %p3645_p0 }
  0xaa   :  { %3527 = vmatprep.mubr.msk.bf16.mxu0 %vm2629_vm6, %v3618_v50  ;;  %3563 = vmatprep.mubr.msk.bf16.mxu1 %vm2629_vm6, %v3636_v51  ;;  %v2346_v50 = vmax.f32 %v3394_v46, %v3728_v1  ;;  %v2355_v51 = vmax.f32 %v3395_v47, %v3728_v1 }
  0xb1   :  { %3528 = vmatmul.mubr.msk.bf16.gmra.mrb[12].mxu0 %vm2629_vm6, %v3619_v52  ;;  %3564 = vmatmul.mubr.msk.bf16.gmra.mrb[12].mxu1 %vm2629_vm6, %v3637_v53 }
  0xb2   :  { %3531 = vmatprep.mubr.msk.bf16.mxu0 %vm2629_vm6, %v3620_v54  ;;  %3567 = vmatprep.mubr.msk.bf16.mxu1 %vm2629_vm6, %v3638_v55 }
  0xb9   :  { %3532 = vmatmul.mubr.msk.bf16.gmra.mrb[16].mxu0 %vm2629_vm6, %v3621_v56  ;;  %3568 = vmatmul.mubr.msk.bf16.gmra.mrb[16].mxu1 %vm2629_vm6, %v3639_v57  ;;  %v3594_v56 = vpack.c.bf16 %v2355_v51, %v2346_v50 }
  0xba   :  { %3535 = vmatprep.mubr.msk.bf16.mxu0 %vm2629_vm6, %v3622_v58  ;;  %3571 = vmatprep.mubr.msk.bf16.mxu1 %vm2629_vm6, %v3640_v59 }
  0xbb   :  { %3595 = vmatpush3.bf16.msra.mxu1 %v3594_v56 }
  0xc1   :  { %3536 = vmatmul.mubr.msk.bf16.gmra.mrb[20].mxu0 %vm2629_vm6, %v3623_v60  ;;  %3572 = vmatmul.mubr.msk.bf16.gmra.mrb[20].mxu1 %vm2629_vm6, %v3641_v61 }
  0xc2   :  { %3539 = vmatprep.mubr.msk.bf16.mxu0 %vm2629_vm6, %v3624_v21  ;;  %3575 = vmatprep.mubr.msk.bf16.mxu1 %vm2629_vm6, %v3642_v62 }
  0xc9   :  { %3540 = vmatmul.mubr.msk.bf16.gmra.mrb[24].mxu0 %vm2629_vm6, %v3625_v6  ;;  %3576 = vmatmul.mubr.msk.bf16.gmra.mrb[24].mxu1 %vm2629_vm6, %v3643_v39 }
  0xca   :  { %3543 = vmatprep.mubr.msk.bf16.mxu0 %vm2629_vm6, %v3626_v63  ;;  %3587 = vmatprep.mubr.msk.f32.mxu1 %vm3670_vm8, %v3668_v40 }
  0xd1   :  { %3544 = vmatmul.mubr.msk.bf16.gmra.mrb[28].mxu0 %vm2629_vm6, %v3627_v44 }
  0xd2   :  { %3547 = vmatprep.mubr.msk.bf16.mxu0 %vm2629_vm6, %v3628_v45 }
  0xd9   :  { %3548 = vmatmul.mubr.msk.bf16.gmra.mrb[32].mxu0 %vm2629_vm6, %v3629_v0 }
 0x16c   :  { %v3517_v7 = vpop.f32.mrb[0].mxu0  ;;  %v4355_v23 = vpop.f32.mrb[0].mxu1 }
 0x16d   :  { %v2760_v9 = vpop.f32.mrb[1].mxu0  ;;  %v4357_v10 = vpop.f32.mrb[1].mxu1  ;;  %v3017_v17 = vmax.f32 %v3517_v7, 0.0 }
 0x16e   :  { %v3015_v12 = vmax.f32 %v2760_v9, 0.0  ;;  %v3518_v13 = vpop.f32.mrb[2].mxu0  ;;  %v4359_v14 = vpop.f32.mrb[2].mxu1 }
 0x16f   :  { %v2763_v15 = vpop.f32.mrb[3].mxu0  ;;  %v4361_v16 = vpop.f32.mrb[3].mxu1  ;;  %v3018_v20 = vmax.f32 %v3518_v13, 0.0  ;;  %v3083_v25 = vsel %vm3079_vm7, %v3017_v17, 0.0 }
 0x170   :  { %v3016_v18 = vmax.f32 %v2763_v15, 0.0  ;;  %v3080_v19 = vsel %vm3079_vm7, %v3015_v12, 0.0 }
 0x171   :  { %v3085_v31 = vsel %vm3079_vm7, %v3018_v20, 0.0 }
 0x172   :  { %v3081_v22 = vsel %vm3079_vm7, %v3016_v18, 0.0 }
 0x173   :  { %v3082_v24 = vadd.f32 %v3081_v22, %v3080_v19 }
 0x174   :  { %v3521_v26 = vpop.f32.mrb[4].mxu0  ;;  %v4366_v27 = vpop.f32.mrb[4].mxu1 }
 0x175   :  { %v3084_v28 = vadd.f32 %v3083_v25, %v3082_v24  ;;  %v2776_v29 = vpop.f32.mrb[5].mxu0  ;;  %v4368_v30 = vpop.f32.mrb[5].mxu1  ;;  %v3021_v37 = vmax.f32 %v3521_v26, 0.0 }
 0x176   :  { %v3019_v32 = vmax.f32 %v2776_v29, 0.0  ;;  %v3522_v36 = vpop.f32.mrb[6].mxu0  ;;  %v4371_v33 = vpop.f32.mrb[6].mxu1 }
 0x177   :  { %v3086_v2 = vadd.f32 %v3085_v31, %v3084_v28  ;;  %v2779_v34 = vpop.f32.mrb[7].mxu0  ;;  %v4373_v35 = vpop.f32.mrb[7].mxu1  ;;  %v3022_v48 = vmax.f32 %v3522_v36, 0.0  ;;  %v3091_v53 = vsel %vm3079_vm7, %v3021_v37, 0.0 }
 0x178   :  { %v3087_v38 = vsel %vm3079_vm7, %v3019_v32, 0.0  ;;  %v3020_v42 = vmax.f32 %v2779_v34, 0.0 }
 0x179   :  { %v3088_v43 = vadd.f32 %v3087_v38, %v3086_v2  ;;  %v3093_v60 = vsel %vm3079_vm7, %v3022_v48, 0.0 }
 0x17a   :  { %v3089_v49 = vsel %vm3079_vm7, %v3020_v42, 0.0 }
 0x17b   :  { %v3090_v52 = vadd.f32 %v3089_v49, %v3088_v43 }
 0x17c   :  { %v3525_v54 = vpop.f32.mrb[8].mxu0  ;;  %v4387_v55 = vpop.f32.mrb[8].mxu1 }
 0x17d   :  { %v3092_v57 = vadd.f32 %v3091_v53, %v3090_v52  ;;  %v2792_v58 = vpop.f32.mrb[9].mxu0  ;;  %v4389_v59 = vpop.f32.mrb[9].mxu1  ;;  %v3025_v39 = vmax.f32 %v3525_v54, 0.0 }
 0x17e   :  { %v3023_v61 = vmax.f32 %v2792_v58, 0.0  ;;  %v3526_v21 = vpop.f32.mrb[10].mxu0  ;;  %v4392_v62 = vpop.f32.mrb[10].mxu1 }
 0x17f   :  { %v3094_v1 = vadd.f32 %v3093_v60, %v3092_v57  ;;  %v2795_v40 = vpop.f32.mrb[11].mxu0  ;;  %v4394_v6 = vpop.f32.mrb[11].mxu1  ;;  %v3026_v0 = vmax.f32 %v3526_v21, 0.0  ;;  %v3099_v4 = vsel %vm3079_vm7, %v3025_v39, 0.0 }
 0x180   :  { %v3095_v63 = vsel %vm3079_vm7, %v3023_v61, 0.0  ;;  %v3024_v44 = vmax.f32 %v2795_v40, 0.0 }
 0x181   :  { %v3096_v45 = vadd.f32 %v3095_v63, %v3094_v1  ;;  %v3101_v12 = vsel %vm3079_vm7, %v3026_v0, 0.0 }
 0x182   :  { %v3097_v3 = vsel %vm3079_vm7, %v3024_v44, 0.0 }
 0x183   :  { %v3098_v5 = vadd.f32 %v3097_v3, %v3096_v45 }
 0x184   :  { %v3529_v8 = vpop.f32.mrb[12].mxu0  ;;  %v4399_v11 = vpop.f32.mrb[12].mxu1 }
 0x185   :  { %v3100_v41 = vadd.f32 %v3099_v4, %v3098_v5  ;;  %v2808_v7 = vpop.f32.mrb[13].mxu0  ;;  %v4401_v9 = vpop.f32.mrb[13].mxu1  ;;  %v3029_v22 = vmax.f32 %v3529_v8, 0.0 }
 0x186   :  { %v3027_v13 = vmax.f32 %v2808_v7, 0.0  ;;  %v3530_v15 = vpop.f32.mrb[14].mxu0  ;;  %v4404_v17 = vpop.f32.mrb[14].mxu1 }
 0x187   :  { %v3102_v18 = vadd.f32 %v3101_v12, %v3100_v41  ;;  %v2811_v19 = vpop.f32.mrb[15].mxu0  ;;  %v4406_v20 = vpop.f32.mrb[15].mxu1  ;;  %v3030_v28 = vmax.f32 %v3530_v15, 0.0  ;;  %v3107_v32 = vsel %vm3079_vm7, %v3029_v22, 0.0 }
 0x188   :  { %v3103_v24 = vsel %vm3079_vm7, %v3027_v13, 0.0  ;;  %v3028_v25 = vmax.f32 %v2811_v19, 0.0 }
 0x189   :  { %v3104_v26 = vadd.f32 %v3103_v24, %v3102_v18  ;;  %v3109_v42 = vsel %vm3079_vm7, %v3030_v28, 0.0 }
 0x18a   :  { %v3105_v29 = vsel %vm3079_vm7, %v3028_v25, 0.0 }
 0x18b   :  { %v3106_v31 = vadd.f32 %v3105_v29, %v3104_v26 }
 0x18c   :  { %v3533_v36 = vpop.f32.mrb[16].mxu0  ;;  %v4411_v2 = vpop.f32.mrb[16].mxu1 }
 0x18d   :  { %v3108_v34 = vadd.f32 %v3107_v32, %v3106_v31  ;;  %v2824_v37 = vpop.f32.mrb[17].mxu0  ;;  %v4413_v38 = vpop.f32.mrb[17].mxu1  ;;  %v3033_v51 = vmax.f32 %v3533_v36, 0.0 }
 0x18e   :  { %v3031_v43 = vmax.f32 %v2824_v37, 0.0  ;;  %v3534_v46 = vpop.f32.mrb[18].mxu0  ;;  %v4416_v47 = vpop.f32.mrb[18].mxu1 }
 0x18f   :  { %v3110_v48 = vadd.f32 %v3109_v42, %v3108_v34  ;;  %v2827_v49 = vpop.f32.mrb[19].mxu0  ;;  %v4418_v50 = vpop.f32.mrb[19].mxu1  ;;  %v3034_v56 = vmax.f32 %v3534_v46, 0.0  ;;  %v3115_v60 = vsel %vm3079_vm7, %v3033_v51, 0.0 }
 0x190   :  { %v3111_v52 = vsel %vm3079_vm7, %v3031_v43, 0.0  ;;  %v3032_v53 = vmax.f32 %v2827_v49, 0.0 }
 0x191   :  { %v3112_v54 = vadd.f32 %v3111_v52, %v3110_v48  ;;  %v3117_v63 = vsel %vm3079_vm7, %v3034_v56, 0.0 }
 0x192   :  { %v3113_v57 = vsel %vm3079_vm7, %v3032_v53, 0.0 }
 0x193   :  { %v3114_v58 = vadd.f32 %v3113_v57, %v3112_v54 }
 0x194   :  { %v3537_v61 = vpop.f32.mrb[20].mxu0  ;;  %v4423_v21 = vpop.f32.mrb[20].mxu1 }
 0x195   :  { %v3116_v1 = vadd.f32 %v3115_v60, %v3114_v58  ;;  %v2840_v40 = vpop.f32.mrb[21].mxu0  ;;  %v4425_v39 = vpop.f32.mrb[21].mxu1  ;;  %v3037_v8 = vmax.f32 %v3537_v61, 0.0 }
 0x196   :  { %v3035_v44 = vmax.f32 %v2840_v40, 0.0  ;;  %v3538_v45 = vpop.f32.mrb[22].mxu0  ;;  %v4428_v0 = vpop.f32.mrb[22].mxu1 }
 0x197   :  { %v3118_v3 = vadd.f32 %v3117_v63, %v3116_v1  ;;  %v2843_v5 = vpop.f32.mrb[23].mxu0  ;;  %v4430_v4 = vpop.f32.mrb[23].mxu1  ;;  %v3038_v13 = vmax.f32 %v3538_v45, 0.0  ;;  %v3123_v19 = vsel %vm3079_vm7, %v3037_v8, 0.0 }
 0x198   :  { %v3119_v41 = vsel %vm3079_vm7, %v3035_v44, 0.0  ;;  %v3036_v7 = vmax.f32 %v2843_v5, 0.0 }
 0x199   :  { %v3120_v12 = vadd.f32 %v3119_v41, %v3118_v3  ;;  %v3125_v29 = vsel %vm3079_vm7, %v3038_v13, 0.0 }
 0x19a   :  { %v3121_v15 = vsel %vm3079_vm7, %v3036_v7, 0.0 }
 0x19b   :  { %v3122_v18 = vadd.f32 %v3121_v15, %v3120_v12 }
 0x19c   :  { %v3541_v22 = vpop.f32.mrb[24].mxu0  ;;  %v4435_v24 = vpop.f32.mrb[24].mxu1 }
 0x19d   :  { %v3124_v25 = vadd.f32 %v3123_v19, %v3122_v18  ;;  %v2856_v26 = vpop.f32.mrb[25].mxu0  ;;  %v4437_v28 = vpop.f32.mrb[25].mxu1  ;;  %v3041_v43 = vmax.f32 %v3541_v22, 0.0 }
 0x19e   :  { %v3039_v31 = vmax.f32 %v2856_v26, 0.0  ;;  %v3542_v32 = vpop.f32.mrb[26].mxu0  ;;  %v4440_v36 = vpop.f32.mrb[26].mxu1 }
 0x19f   :  { %v3126_v34 = vadd.f32 %v3125_v29, %v3124_v25  ;;  %v2859_v37 = vpop.f32.mrb[27].mxu0  ;;  %v4442_v42 = vpop.f32.mrb[27].mxu1  ;;  %v3042_v51 = vmax.f32 %v3542_v32, 0.0  ;;  %v3131_v54 = vsel %vm3079_vm7, %v3041_v43, 0.0 }
 0x1a0   :  { %v3127_v46 = vsel %vm3079_vm7, %v3039_v31, 0.0  ;;  %v3040_v48 = vmax.f32 %v2859_v37, 0.0 }
 0x1a1   :  { %v3128_v49 = vadd.f32 %v3127_v46, %v3126_v34  ;;  %v3133_v60 = vsel %vm3079_vm7, %v3042_v51, 0.0  ;;  %v3051_v46 = vmax.f32 %v4357_v10, 0.0  ;;  %v3055_v10 = vmax.f32 %v4368_v30, 0.0 }
 0x1a2   :  { %v3129_v52 = vsel %vm3079_vm7, %v3040_v48, 0.0  ;;  %v3059_v30 = vmax.f32 %v4389_v59, 0.0  ;;  %v3063_v59 = vmax.f32 %v4401_v9, 0.0  ;;  %v3067_v9 = vmax.f32 %v4413_v38, 0.0 }
 0x1a3   :  { %v3130_v53 = vadd.f32 %v3129_v52, %v3128_v49  ;;  %v3071_v38 = vmax.f32 %v4425_v39, 0.0  ;;  %v3075_v39 = vmax.f32 %v4437_v28, 0.0  ;;  %v3078_v28 = vmax.f32 %v4440_v36, 0.0 }
 0x1a4   :  { %v3545_v56 = vpop.f32.mrb[28].mxu0 }
 0x1a5   :  { %v3132_v57 = vadd.f32 %v3131_v54, %v3130_v53  ;;  %v2872_v58 = vpop.f32.mrb[29].mxu0  ;;  %v3045_v44 = vmax.f32 %v3545_v56, 0.0  ;;  %v3156_v53 = vsel %vm3079_vm7, %v3051_v46, 0.0  ;;  %v3052_v54 = vmax.f32 %v4361_v16, 0.0 }
 0x1a6   :  { %v3043_v61 = vmax.f32 %v2872_v58, 0.0  ;;  %v3546_v1 = vpop.f32.mrb[30].mxu0  ;;  %v3056_v16 = vmax.f32 %v4373_v35, 0.0  ;;  %v3060_v35 = vmax.f32 %v4394_v6, 0.0  ;;  %v3064_v6 = vmax.f32 %v4406_v20, 0.0 }
 0x1a7   :  { %v3134_v40 = vadd.f32 %v3133_v60, %v3132_v57  ;;  %v2875_v63 = vpop.f32.mrb[31].mxu0  ;;  %v3046_v8 = vmax.f32 %v3546_v1, 0.0  ;;  %v3139_v12 = vsel %vm3079_vm7, %v3045_v44, 0.0  ;;  %v3053_v57 = vmax.f32 %v4355_v23, 0.0 }
 0x1a8   :  { %v3135_v45 = vsel %vm3079_vm7, %v3043_v61, 0.0  ;;  %v3044_v3 = vmax.f32 %v2875_v63, 0.0  ;;  %v3054_v60 = vmax.f32 %v4359_v14, 0.0  ;;  %v3158_v61 = vsel %vm3079_vm7, %v3052_v54, 0.0 }
 0x1a9   :  { %v3136_v5 = vadd.f32 %v3135_v45, %v3134_v40  ;;  %v3141_v19 = vsel %vm3079_vm7, %v3046_v8, 0.0  ;;  %v3160_v40 = vsel %vm3079_vm7, %v3053_v57, 0.0  ;;  %v3164_v45 = vsel %vm3079_vm7, %v3055_v10, 0.0 }
 0x1aa   :  { %v3137_v41 = vsel %vm3079_vm7, %v3044_v3, 0.0  ;;  %v3162_v44 = vsel %vm3079_vm7, %v3054_v60, 0.0  ;;  %v3057_v23 = vmax.f32 %v4366_v27, 0.0  ;;  %v3058_v14 = vmax.f32 %v4371_v33, 0.0 }
 0x1ab   :  { %v3138_v7 = vadd.f32 %v3137_v41, %v3136_v5  ;;  %v3166_v8 = vsel %vm3079_vm7, %v3056_v16, 0.0  ;;  %v3061_v27 = vmax.f32 %v4387_v55, 0.0  ;;  %v3062_v33 = vmax.f32 %v4392_v62, 0.0 }
 0x1ac   :  { %v3549_v13 = vpop.f32.mrb[32].mxu0  ;;  %v3065_v55 = vmax.f32 %v4399_v11, 0.0  ;;  %v3066_v62 = vmax.f32 %v4404_v17, 0.0  ;;  %v3182_v46 = vsel %vm3079_vm7, %v3064_v6, 0.0  ;;  %v3068_v20 = vmax.f32 %v4418_v50, 0.0 }
 0x1ad   :  { %v3140_v15 = vadd.f32 %v3139_v12, %v3138_v7  ;;  %v2888_v18 = vpop.f32.mrb[33].mxu0  ;;  %v3049_v31 = vmax.f32 %v3549_v13, 0.0  ;;  %v3168_v7 = vsel %vm3079_vm7, %v3057_v23, 0.0  ;;  %v3170_v13 = vsel %vm3079_vm7, %v3058_v14, 0.0 }
 0x1ae   :  { %v3047_v22 = vmax.f32 %v2888_v18, 0.0  ;;  %v3550_v25 = vpop.f32.mrb[34].mxu0  ;;  %v3069_v11 = vmax.f32 %v4411_v2, 0.0  ;;  %v3070_v17 = vmax.f32 %v4416_v47, 0.0  ;;  %v3190_v57 = vsel %vm3079_vm7, %v3068_v20, 0.0 }
 0x1af   :  { %v4452_v26 = vadd.f32 %v3141_v19, %v3140_v15  ;;  %v2891_v29 = vpop.f32.mrb[35].mxu0  ;;  %v3050_v37 = vmax.f32 %v3550_v25, 0.0  ;;  %v3152_v49 = vsel %vm3079_vm7, %v3049_v31, 0.0  ;;  %v3172_v15 = vsel %vm3079_vm7, %v3059_v30, 0.0 }
 0x1b0   :  { %v3048_v32 = vmax.f32 %v2891_v29, 0.0  ;;  %v3149_v34 = vsel %vm3079_vm7, %v3047_v22, 0.0  ;;  %v3174_v22 = vsel %vm3079_vm7, %v3060_v35, 0.0  ;;  %v3176_v29 = vsel %vm3079_vm7, %v3061_v27, 0.0 }
 0x1b1   :  { %v3154_v52 = vsel %vm3079_vm7, %v3050_v37, 0.0  ;;  %v3192_v60 = vsel %vm3079_vm7, %v3069_v11, 0.0  ;;  %v3194_v10 = vsel %vm3079_vm7, %v3070_v17, 0.0  ;;  %v3072_v50 = vmax.f32 %v4430_v4, 0.0 }
 0x1b2   :  { %v3150_v43 = vsel %vm3079_vm7, %v3048_v32, 0.0  ;;  %v3178_v32 = vsel %vm3079_vm7, %v3062_v33, 0.0  ;;  %v3073_v2 = vmax.f32 %v4423_v21, 0.0  ;;  %v3074_v47 = vmax.f32 %v4428_v0, 0.0 }
 0x1b3   :  { %v3151_v48 = vadd.f32 %v3150_v43, %v3149_v34  ;;  %v3180_v34 = vsel %vm3079_vm7, %v3063_v59, 0.0  ;;  %v3204_v4 = vsel %vm3079_vm7, %v3075_v39, 0.0  ;;  %v3076_v14 = vmax.f32 %v4442_v42, 0.0 }
 0x1b4   :  { %v3200_v16 = vsel %vm3079_vm7, %v3073_v2, 0.0  ;;  %v3210_v35 = vsel %vm3079_vm7, %v3078_v28, 0.0 }
 0x1b5   :  { %v3153_v51 = vadd.f32 %v3152_v49, %v3151_v48  ;;  %v3184_v49 = vsel %vm3079_vm7, %v3065_v55, 0.0 }
 0x1b7   :  { %v3155_v56 = vadd.f32 %v3154_v52, %v3153_v51  ;;  %v3186_v52 = vsel %vm3079_vm7, %v3066_v62, 0.0 }
 0x1b9   :  { %v3157_v58 = vadd.f32 %v3156_v53, %v3155_v56  ;;  %v3188_v53 = vsel %vm3079_vm7, %v3067_v9, 0.0 }
 0x1bb   :  { %v3159_v1 = vadd.f32 %v3158_v61, %v3157_v58 }
 0x1bd   :  { %v3161_v63 = vadd.f32 %v3160_v40, %v3159_v1  ;;  %v3196_v1 = vsel %vm3079_vm7, %v3071_v38, 0.0 }
 0x1bf   :  { %v3163_v3 = vadd.f32 %v3162_v44, %v3161_v63  ;;  %v3198_v44 = vsel %vm3079_vm7, %v3072_v50, 0.0 }
 0x1c1   :  { %v3165_v5 = vadd.f32 %v3164_v45, %v3163_v3  ;;  %v3143_v3 = vrot.slane %v4452_v26, 4 }
 0x1c3   :  { %v3167_v41 = vadd.f32 %v3166_v8, %v3165_v5  ;;  %v3202_v5 = vsel %vm3079_vm7, %v3074_v47, 0.0  ;;  %v3077_v8 = vmax.f32 %v4435_v24, 0.0  ;;  %v3144_v0 = vadd.f32 %v3143_v3, %v4452_v26 }
 0x1c5   :  { %v3169_v12 = vadd.f32 %v3168_v7, %v3167_v41  ;;  %v3206_v41 = vsel %vm3079_vm7, %v3076_v14, 0.0 }
 0x1c7   :  { %v3171_v18 = vadd.f32 %v3170_v13, %v3169_v12  ;;  %v3208_v12 = vsel %vm3079_vm7, %v3077_v8, 0.0  ;;  %v3145_v13 = vrot.slane %v3144_v0, 2 }
 0x1c9   :  { %v3173_v19 = vadd.f32 %v3172_v15, %v3171_v18  ;;  %v3146_v27 = vadd.f32 %v3145_v13, %v3144_v0 }
 0x1cb   :  { %v3175_v25 = vadd.f32 %v3174_v22, %v3173_v19  ;;  %v3147_v33 = vrot.slane %v3146_v27, 1 }
 0x1cd   :  { %v3177_v31 = vadd.f32 %v3176_v29, %v3175_v25  ;;  %v3148_v59 = vadd.f32 %v3147_v33, %v3146_v27 }
 0x1cf   :  { %v3179_v37 = vadd.f32 %v3178_v32, %v3177_v31  ;;  %v3218_v36 = vmul.f32 0.00390625, %v3148_v59  ;;  %v3464_v32 = vld [vmem:[#allocation31 + $0x20] ss:$0 sm:$0xff] }
 0x1d1   :  { %v3181_v43 = vadd.f32 %v3180_v34, %v3179_v37 }
 0x1d3   :  { %v3183_v48 = vadd.f32 %v3182_v46, %v3181_v43 }
 0x1d5   :  { %v3185_v51 = vadd.f32 %v3184_v49, %v3183_v48 }
 0x1d7   :  { %v3187_v54 = vadd.f32 %v3186_v52, %v3185_v51 }
 0x1d9   :  { %v3189_v56 = vadd.f32 %v3188_v53, %v3187_v54 }
 0x1db   :  { %v3191_v58 = vadd.f32 %v3190_v57, %v3189_v56 }
 0x1dd   :  { %v3193_v61 = vadd.f32 %v3192_v60, %v3191_v58 }
 0x1df   :  { %v3195_v40 = vadd.f32 %v3194_v10, %v3193_v61 }
 0x1e1   :  { %v3197_v63 = vadd.f32 %v3196_v1, %v3195_v40 }
 0x1e3   :  { %v3199_v45 = vadd.f32 %v3198_v44, %v3197_v63 }
 0x1e5   :  { %v3201_v23 = vadd.f32 %v3200_v16, %v3199_v45 }
 0x1e7   :  { %v3203_v21 = vadd.f32 %v3202_v5, %v3201_v23 }
 0x1e9   :  { %v3205_v30 = vadd.f32 %v3204_v4, %v3203_v21 }
 0x1eb   :  { %v3207_v7 = vadd.f32 %v3206_v41, %v3205_v30 }
 0x1ed   :  { %v3209_v15 = vadd.f32 %v3208_v12, %v3207_v7 }
 0x1ef   :  { %v3211_v18 = vadd.f32 %v3210_v35, %v3209_v15 }
 0x1f1   :  { %v3212_v42 = vrot.slane %v3211_v18, 4 }
 0x1f3   :  { %v3213_v19 = vadd.f32 %v3212_v42, %v3211_v18 }
 0x1f5   :  { %v3214_v24 = vrot.slane %v3213_v19, 2 }
 0x1f7   :  { %v3215_v22 = vadd.f32 %v3214_v24, %v3213_v19 }
 0x1f9   :  { %v3216_v26 = vrot.slane %v3215_v22, 1 }
 0x1fb   :  { %v3217_v25 = vadd.f32 %v3216_v26, %v3215_v22 }
 0x1fd   :  { %v3219_v29 = vmul.f32 0.00390625, %v3217_v25 }
 0x1ff   :  { %v3232_v31 = vsel %vm3231_vm9, %v3219_v29, %v3218_v36 }
 0x200   :  { %3588 = vmatmul.mubr.msk.f32.vlgmr.msra.gmra.mrb[28].mxu1 %vm3079_vm7, %v3232_v31 }
 0x2d3   :  { %v3301_v34 = vpop.f32.mrb[28].mxu1 }
 0x2d4   :  { %v3302_v6 = vadd.f32 %v3464_v32, %v3301_v34  ;;  %v3589_v37 = vpop.f32.mrb[29].mxu1 }
 0x2d6   :  { %3305 = vst [vmem:[#allocation27] sm:$0x3] %v3302_v6 }
 0x2d7   :  { %3655 = shalt.err (!%p3652_p4)
}
 0x2d8   :  { %s3656_s2 = scalar_lea.hbm %s4538_s9, 32 }
 0x2d9   :  { %p3657_p5 = scmp.ne.s32.totalorder %s4538_s9, %s3656_s2  ;;  %p3660_p6 = scmp.lt.u32.totalorder %s3656_s2, %s4538_s9 }
 0x2db   :  { %p3662_p7 = pnand %p3660_p6, %p3657_p5 }
 0x2dd   :  { %3665 = shalt.err (!%p3662_p7)
}
 0x2de   :  { %3315 = dma.vmem_to_hbm [thread:$0]  %s3313_s15, 32, %s4538_s9, [#allocation28]  }
 0x2df   :  { %3666 = dma.done.wait [#allocation28], 32  }
 0x2e0   :  { %3667 = vsyncadd [#allocation28], 4294967264 }
 0x2e1   :  { %3319 = vsyncpa [#allocation28], 1 }

</bundles_post_ra>
